<compile_context>
chip_gen: v7x
topology: tpu7x:2x2x1
jax: 0.10.0
libtpu: 0.0.40
codegen_flags: <defaults>
</compile_context>

<pallas_src>
import functools

import jax
import jax.numpy as jnp
import numpy as np
from jax.experimental import pallas as pl
from jax.experimental.pallas import tpu as pltpu

_H1, _H2 = 128, 64   # hidden sizes from the PyTorch module
_LANE = 128          # lane width / v5e MXU tile
_MXU = 256           # v6e / v7x MXU tile


def critic_kernel(x_ref, w1_ref, b1_ref, w2_ref, b2_ref, w3_ref, b3_ref, o_ref):
    # Layer 1: (TB, n_in) @ (n_in, 128) -> (TB, 128); MXU, f32 accumulation.
    h1 = jnp.dot(x_ref[...], w1_ref[...], preferred_element_type=jnp.float32)
    h1 = jnp.maximum(h1 + b1_ref[...], 0.0)            # bias + ReLU in f32 (VPU)
    # Layer 2: (TB, 128) @ (128, 64) -> (TB, 64).  LHS cast back to the compute
    # dtype so both MXU operands stay narrow (bf16 path), accumulation in f32.
    h2 = jnp.dot(h1.astype(w2_ref.dtype), w2_ref[...],
                 preferred_element_type=jnp.float32)
    h2 = jnp.maximum(h2 + b2_ref[...], 0.0)
    # Layer 3 (64 -> 1), computed transposed: contract the 64-dim of w3 (1, 64)
    # against the 64-dim of h2 (TB, 64) -> (1, TB).  Batch ends up on lanes so
    # the output store is lane-dense (unmasked vst), and we never issue an
    # N=1 matmul.
    v = jax.lax.dot_general(
        w3_ref[...], h2.astype(w3_ref.dtype),
        dimension_numbers=(((1,), (1,)), ((), ())),
        preferred_element_type=jnp.float32,
    )
    o_ref[...] = v + b3_ref[0]


def _round_down(x, m):
    return (x // m) * m


def _vmem_limit_bytes(tb, n_in, compute_dtype):
    """Explicit scoped-VMEM budget: 2x streamed tile + weights + intermediates."""
    in_bytes = jnp.dtype(compute_dtype).itemsize
    stream = 2 * tb * n_in * in_bytes                       # double-buffered input
    out = 2 * tb * 4                                        # double-buffered (1,TB) f32
    weights = 2 * (n_in * _H1 + _H1 * _H2 + _H2) * in_bytes # (double-buffered)
    biases = 2 * (_H1 + _H2) * 4
    inter = 2 * tb * (_H1 + _H2) * 4                        # live f32 h1/h2 (+slack)
    est = stream + out + weights + biases + inter + (4 << 20)
    # Never below the v6e/v7x default (32 MiB), never above v7x physical (64 MiB).
    return int(min(64 << 20, max(32 << 20, 2 * est)))


def _critic_call(x, w1, b1, w2, b2, w3, b3, tb):
    rows, n_in = x.shape
    assert rows % tb == 0
    return pl.pallas_call(
        critic_kernel,
        out_shape=jax.ShapeDtypeStruct((1, rows), jnp.float32),
        grid=(rows // tb,),
        in_specs=[
            # Streamed batch tile (double-buffered HBM->VMEM by the pipeline).
            pl.BlockSpec((tb, n_in), lambda i: (i, 0)),
            # Weights/biases: constant index_map -> DMA'd once, VMEM-resident.
            # TODO(synk): for very large n_inputs add a K grid axis over n_in
            # (w1 alone can exceed v7x's 64 MiB VMEM) and single-buffer the
            # weight blocks (pipeline_mode=pl.Buffered(1)); at these sizes the
            # extra buffer is only a few KiB so the default pipeline is kept.
            pl.BlockSpec((n_in, _H1), lambda i: (0, 0)),
            pl.BlockSpec((1, _H1), lambda i: (0, 0)),
            pl.BlockSpec((_H1, _H2), lambda i: (0, 0)),
            pl.BlockSpec((1, _H2), lambda i: (0, 0)),
            pl.BlockSpec((1, _H2), lambda i: (0, 0)),
            # Single scalar bias: 1-D SMEM, not a padded VMEM tile.
            pl.BlockSpec(memory_space=pltpu.MemorySpace.SMEM),
        ],
        out_specs=pl.BlockSpec((1, tb), lambda i: (0, i)),
        compiler_params=pltpu.CompilerParams(
            dimension_semantics=("parallel",),
            vmem_limit_bytes=_vmem_limit_bytes(tb, n_in, x.dtype),
        ),
    )(x, w1, b1, w2, b2, w3, b3)


@functools.partial(jax.jit, static_argnames=("block_b", "compute_dtype"))
def critic_forward(state, params, *, block_b=2048, compute_dtype=jnp.bfloat16):
    """state: (B, n_inputs). Returns (B, 1) f32 state-value estimates."""
    w1, b1, w2, b2, w3, b3 = params
    B, n_in = state.shape

    # MXU operands in the (narrow) compute dtype — the HBM stream of `state`
    # is cast here, before the kernel, so DMA traffic is already halved in the
    # default bf16 path.  Biases and all accumulation stay f32.
    x = state.astype(compute_dtype)
    w1, w2, w3 = (w.astype(compute_dtype) for w in (w1, w2, w3))
    b1, b2, b3 = (b.astype(jnp.float32) for b in (b1, b2, b3))

    if B < 2 * _LANE:
        # Tiny batch: one exact block covering the whole batch (block shape ==
        # array shape, so no (8,128) alignment constraint, no padding, no copy).
        out = _critic_call(x, w1, b1, w2, b2, w3, b3, tb=B)
    else:
        # Large batch: lane-aligned tiles (multiple of 256 to fill the v6e/v7x
        # MXU, 128 minimum for v5e) and always >= 2 blocks so the "parallel"
        # batch axis can shard across both v7x TensorCores.  The ragged tail
        # (< tb rows) runs through a second single-block call instead of a
        # wrapper-side jnp.pad, so there is no extra HBM copy and no wasted
        # in-kernel DMA/compute.
        # TODO(synk): optionally stream x^T (n_in, TB) to keep every
        # intermediate lane-dense in batch for very small n_inputs.
        tb = min(block_b, B // 2)
        align = _MXU if tb >= _MXU else _LANE
        tb = max(_LANE, _round_down(tb, align))
        main_rows = _round_down(B, tb)
        out = _critic_call(x[:main_rows], w1, b1, w2, b2, w3, b3, tb=tb)
        if main_rows < B:
            tail = _critic_call(x[main_rows:], w1, b1, w2, b2, w3, b3,
                                tb=B - main_rows)
            out = jnp.concatenate([out, tail], axis=1)

    # (1, B) lane-major values -> (B, 1) column.
    return out[0][:, None]


def init_params(key, n_inputs):
    """Deterministic init mirroring nn.Linear default (uniform +/- 1/sqrt(fan_in)).

    w1, w2 stored as (in, out) so y = x @ W + b; w3 stored as a (1, 64) row
    (PyTorch layout for Linear(64, 1)) for the transposed final projection;
    b3 is a single scalar stored as shape (1,).
    """
    specs = [
        (n_inputs, (n_inputs, _H1), (1, _H1)),
        (_H1, (_H1, _H2), (1, _H2)),
        (_H2, (1, _H2), (1,)),
    ]
    params = []
    for fan_in, w_shape, b_shape in specs:
        kw, kb, key = jax.random.split(key, 3)
        bound = 1.0 / np.sqrt(fan_in)
        params.append(jax.random.uniform(kw, w_shape, jnp.float32, -bound, bound))
        params.append(jax.random.uniform(kb, b_shape, jnp.float32, -bound, bound))
    return tuple(params)


def reference_forward(state, params):
    w1, b1, w2, b2, w3, b3 = params
    h1 = jnp.maximum(state @ w1 + b1, 0.0)
    h2 = jnp.maximum(h1 @ w2 + b2, 0.0)
    return h2 @ w3.T + b3


if __name__ == "__main__":
    key = jax.random.PRNGKey(0)
    k_x, k_x2, k_p = jax.random.split(key, 3)

    n_inputs = 16
    params = init_params(k_p, n_inputs)

    # Small batch, exact f32 path (single block covering the whole batch).
    state = jax.random.normal(k_x, (8, n_inputs), jnp.float32)
    out = jax.block_until_ready(
        critic_forward(state, params, compute_dtype=jnp.float32))
    ref = reference_forward(state, params)
    np.testing.assert_allclose(np.asarray(out), np.asarray(ref), rtol=1e-5, atol=1e-5)
    assert out.shape == (8, 1)

    # Ragged larger batch, default bf16-operand path: exercises the multi-block
    # grid (megacore-parallel batch axis) plus the no-pad ragged-tail call.
    state2 = jax.random.normal(k_x2, (300, n_inputs), jnp.float32)
    out2 = jax.block_until_ready(critic_forward(state2, params))
    ref2 = reference_forward(state2, params)
    np.testing.assert_allclose(np.asarray(out2), np.asarray(ref2), rtol=5e-2, atol=5e-2)
    assert out2.shape == (300, 1)

    print("KERNEL_OK")
</pallas_src>

<mosaic_0001>
module attributes {stable_mosaic.version = 11 : i64} {
  func.func @critic_kernel(%arg0: i32, %arg1: memref<8x16xf32, #tpu.memory_space<vmem>>, %arg2: memref<16x128xf32, #tpu.memory_space<vmem>>, %arg3: memref<1x128xf32, #tpu.memory_space<vmem>>, %arg4: memref<128x64xf32, #tpu.memory_space<vmem>>, %arg5: memref<1x64xf32, #tpu.memory_space<vmem>>, %arg6: memref<1x64xf32, #tpu.memory_space<vmem>>, %arg7: memref<1xf32, #tpu.memory_space<smem>>, %arg8: memref<1x8xf32, #tpu.memory_space<vmem>>) attributes {dimension_semantics = [#tpu.dimension_semantics<parallel>], iteration_bounds = array<i64: 1>, scalar_prefetch = 0 : i64, scratch_operands = 0 : i64, tpu.core_type = #tpu.core_type<tc>, window_params = [{transform_indices = @transform_0, window_bounds = array<i64: 8, 16>}, {pipeline_mode = #tpu.pipeline_mode<synchronous>, transform_indices = @transform_1, window_bounds = array<i64: 16, 128>}, {pipeline_mode = #tpu.pipeline_mode<synchronous>, transform_indices = @transform_2, window_bounds = array<i64: 1, 128>}, {pipeline_mode = #tpu.pipeline_mode<synchronous>, transform_indices = @transform_3, window_bounds = array<i64: 128, 64>}, {pipeline_mode = #tpu.pipeline_mode<synchronous>, transform_indices = @transform_4, window_bounds = array<i64: 1, 64>}, {pipeline_mode = #tpu.pipeline_mode<synchronous>, transform_indices = @transform_5, window_bounds = array<i64: 1, 64>}, {transform_indices = @transform_6, window_bounds = array<i64: 1>}, {transform_indices = @transform_7, window_bounds = array<i64: 1, 8>}]} {
    %c0 = arith.constant 0 : index
    %c0_0 = arith.constant 0 : index
    %0 = vector.load %arg1[%c0, %c0_0] : memref<8x16xf32, #tpu.memory_space<vmem>>, vector<8x16xf32>
    %c0_1 = arith.constant 0 : index
    %c0_2 = arith.constant 0 : index
    %1 = vector.load %arg2[%c0_1, %c0_2] : memref<16x128xf32, #tpu.memory_space<vmem>>, vector<16x128xf32>
    %cst = arith.constant dense<0.000000e+00> : vector<8x128xf32>
    %2 = tpu.matmul %0, %1, %cst {dimension_numbers = #tpu.dot_dimension_numbers<[1], [0], [0], [1], [0, 0, 1, 1], [], []>} : vector<8x16xf32>, vector<16x128xf32>, vector<8x128xf32> -> vector<8x128xf32>
    %c0_3 = arith.constant 0 : index
    %c0_4 = arith.constant 0 : index
    %3 = vector.load %arg3[%c0_3, %c0_4] : memref<1x128xf32, #tpu.memory_space<vmem>>, vector<1x128xf32>
    %4 = vector.broadcast %3 : vector<1x128xf32> to vector<8x128xf32>
    %5 = arith.addf %2, %4 : vector<8x128xf32>
    %cst_5 = arith.constant 0.000000e+00 : f32
    %6 = vector.broadcast %cst_5 : f32 to vector<8x128xf32>
    %7 = arith.maximumf %5, %6 : vector<8x128xf32>
    %c0_6 = arith.constant 0 : index
    %c0_7 = arith.constant 0 : index
    %8 = vector.load %arg4[%c0_6, %c0_7] : memref<128x64xf32, #tpu.memory_space<vmem>>, vector<128x64xf32>
    %cst_8 = arith.constant dense<0.000000e+00> : vector<8x64xf32>
    %9 = tpu.matmul %7, %8, %cst_8 {dimension_numbers = #tpu.dot_dimension_numbers<[1], [0], [0], [1], [0, 0, 1, 1], [], []>} : vector<8x128xf32>, vector<128x64xf32>, vector<8x64xf32> -> vector<8x64xf32>
    %c0_9 = arith.constant 0 : index
    %c0_10 = arith.constant 0 : index
    %10 = vector.load %arg5[%c0_9, %c0_10] : memref<1x64xf32, #tpu.memory_space<vmem>>, vector<1x64xf32>
    %11 = vector.broadcast %10 : vector<1x64xf32> to vector<8x64xf32>
    %12 = arith.addf %9, %11 : vector<8x64xf32>
    %cst_11 = arith.constant 0.000000e+00 : f32
    %13 = vector.broadcast %cst_11 : f32 to vector<8x64xf32>
    %14 = arith.maximumf %12, %13 : vector<8x64xf32>
    %c0_12 = arith.constant 0 : index
    %c0_13 = arith.constant 0 : index
    %15 = vector.load %arg6[%c0_12, %c0_13] : memref<1x64xf32, #tpu.memory_space<vmem>>, vector<1x64xf32>
    %cst_14 = arith.constant dense<0.000000e+00> : vector<1x8xf32>
    %16 = tpu.matmul %15, %14, %cst_14 {dimension_numbers = #tpu.dot_dimension_numbers<[1], [1], [0], [0], [0, 0, 1, 0], [], []>} : vector<1x64xf32>, vector<8x64xf32>, vector<1x8xf32> -> vector<1x8xf32>
    %c0_15 = arith.constant 0 : index
    %17 = memref.load %arg7[%c0_15] : memref<1xf32, #tpu.memory_space<smem>>
    %18 = vector.broadcast %17 : f32 to vector<1x8xf32>
    %19 = arith.addf %16, %18 : vector<1x8xf32>
    %c0_16 = arith.constant 0 : index
    %c0_17 = arith.constant 0 : index
    %20 = vector.load %arg8[%c0_16, %c0_17] : memref<1x8xf32, #tpu.memory_space<vmem>>, vector<1x8xf32>
    tpu.vector_store %arg8[%c0_16, %c0_17], %19 {strides = array<i32>} : memref<1x8xf32, #tpu.memory_space<vmem>>, vector<1x8xf32>,
    return
  }
  func.func @transform_0(%arg0: i32) -> (i32, i32) {
    %c0_i32 = arith.constant 0 : i32
    %c0_i32_0 = arith.constant 0 : i32
    return %arg0, %c0_i32 : i32, i32
  }
  func.func @transform_1(%arg0: i32) -> (i32, i32) {
    %c0_i32 = arith.constant 0 : i32
    %c0_i32_0 = arith.constant 0 : i32
    %c0_i32_1 = arith.constant 0 : i32
    return %c0_i32, %c0_i32_0 : i32, i32
  }
  func.func @transform_2(%arg0: i32) -> (i32, i32) {
    %c0_i32 = arith.constant 0 : i32
    %c0_i32_0 = arith.constant 0 : i32
    %c0_i32_1 = arith.constant 0 : i32
    return %c0_i32, %c0_i32_0 : i32, i32
  }
  func.func @transform_3(%arg0: i32) -> (i32, i32) {
    %c0_i32 = arith.constant 0 : i32
    %c0_i32_0 = arith.constant 0 : i32
    %c0_i32_1 = arith.constant 0 : i32
    return %c0_i32, %c0_i32_0 : i32, i32
  }
  func.func @transform_4(%arg0: i32) -> (i32, i32) {
    %c0_i32 = arith.constant 0 : i32
    %c0_i32_0 = arith.constant 0 : i32
    %c0_i32_1 = arith.constant 0 : i32
    return %c0_i32, %c0_i32_0 : i32, i32
  }
  func.func @transform_5(%arg0: i32) -> (i32, i32) {
    %c0_i32 = arith.constant 0 : i32
    %c0_i32_0 = arith.constant 0 : i32
    %c0_i32_1 = arith.constant 0 : i32
    return %c0_i32, %c0_i32_0 : i32, i32
  }
  func.func @transform_6(%arg0: i32) -> i32 {
    %c0_i32 = arith.constant 0 : i32
    %c0_i32_0 = arith.constant 0 : i32
    return %c0_i32 : i32
  }
  func.func @transform_7(%arg0: i32) -> (i32, i32) {
    %c0_i32 = arith.constant 0 : i32
    %c0_i32_0 = arith.constant 0 : i32
    return %c0_i32, %arg0 : i32, i32
  }
}

</mosaic_0001>

<bundles_post_ra>
// kernel: critic_forward.1
= control target key start
LH: loop header
LB: loop body
LE: loop exit
PB: predicated region body
PF: predicated region fallthrough
CT: control target
= control target key end

     0   :  { %v432_v2 = vmov 0.0|0.0   ;;  %vm433_vm0 = vmmov 0   ;;  %v434_v4 = vmov 0.0   ;;  %vm38_vm1 = vcmask 130048   ;;  %s560_s0 = inlined_call_operand.vmem [shape: f32[8,16], index: 0, kind: input, shape index: {}]   ;;  %s561_s1 = inlined_call_operand.vmem [shape: f32[16,128], index: 1, kind: input, shape index: {}]   ;;  %s562_s2 = inlined_call_operand.vmem [shape: f32[1,128], index: 2, kind: input, shape index: {}]   ;;  %s563_s3 = inlined_call_operand.vmem [shape: f32[128,64], index: 3, kind: input, shape index: {}]   ;;  %s564_s4 = inlined_call_operand.vmem [shape: f32[1,64], index: 4, kind: input, shape index: {}]   ;;  %s565_s5 = inlined_call_operand.vmem [shape: f32[1,64], index: 5, kind: input, shape index: {}]   ;;  %s566_s6 = inlined_call_operand.<no memory space> [shape: f32[1], index: 6, kind: input, shape index: {}]   ;;  %s567_s7 = inlined_call_operand.hbm [shape: f32[1,8], index: 7, kind: output, shape index: {}]  }
   0x1   :  { %v29_v0 = vld [vmem:[%s561_s1] sm:$0xff]  ;;  %v30_v1 = vld [vmem:[%s561_s1 + $0x8] sm:$0xff]  ;;  %377 = vmatprep.subr.bf16.mxu0 %v432_v2  ;;  %334 = vmatprep.mubr.msk.f32.mxu0 %vm433_vm0, %v434_v4  ;;  %v115_v7 = vld [vmem:[%s563_s3 + $0x10] sm:$0xff] }
   0x2   :  { %v378_v3 = vpack.c.bf16 %v30_v1, %v29_v0  ;;  %v113_v5 = vld [vmem:[%s563_s3] sm:$0xff]  ;;  %v114_v6 = vld [vmem:[%s563_s3 + $0x8] sm:$0xff]  ;;  %380 = vmatprep.subr.bf16.mxu1 %v432_v2  ;;  %v116_v9 = vld [vmem:[%s563_s3 + $0x18] sm:$0xff]  ;;  %369 = vmatprep.mubr.msk.f32.mxu1 %vm433_vm0, %v434_v4 }
   0x3   :  { %v381_v8 = vpack.c.bf16 %v114_v6, %v113_v5  ;;  %v28_v10 = vld [vmem:[%s560_s0] sm:$0xff]  ;;  %v384_v11 = vpack.c.bf16 %v116_v9, %v115_v7  ;;  %v118_v13 = vld [vmem:[%s563_s3 + $0x28] sm:$0xff] }
   0x4   :  { %379 = vmatpush3.bf16.msra.mxu0 %v378_v3  ;;  %v117_v12 = vld [vmem:[%s563_s3 + $0x20] sm:$0xff] }
   0x5   :  { %382 = vmatpush3.bf16.msra.mxu1 %v381_v8  ;;  %372 = vmatprep.subr.mxu0 %v434_v4 }
   0x6   :  { %383 = vmatprep.subr.bf16.mxu1 %v432_v2 }
   0x7   :  { %335 = vmatmul.mubr.msk.f32.vlgmr.msra.gmra.mrb[0].mxu0 %vm38_vm1, %v28_v10 }
   0x8   :  { %13 = vsyncpa [#allocation4], 0  ;;  %374 = vmatprep.mubr.msk.f32.mxu0 %vm433_vm0, %v434_v4  ;;  %v387_v14 = vpack.c.bf16 %v118_v13, %v117_v12  ;;  %v119_v15 = vld [vmem:[%s563_s3 + $0x30] sm:$0xff]  ;;  %v120_v16 = vld [vmem:[%s563_s3 + $0x38] sm:$0xff]  ;;  %vm210_vm2 = vcmask 523264   ;;  %v209_v41 = vstv %s566_s6  ;;  %s435_s18 = smov [#allocation3]  }
   0x9   :  { %385 = vmatpush3.bf16.msra.mxu1 %v384_v11  ;;  %v390_v17 = vpack.c.bf16 %v120_v16, %v119_v15  ;;  %v121_v18 = vld [vmem:[%s563_s3 + $0x40] sm:$0xff]  ;;  %v122_v19 = vld [vmem:[%s563_s3 + $0x48] sm:$0xff]  ;;  %v123_v21 = vld [vmem:[%s563_s3 + $0x50] sm:$0xff]  ;;  %s295_s19 = sshll.u32 %s435_s18, 4  ;;  %vm287_vm3 = vcmask 57344   ;;  %s296_s19 = int_to_ptr.vmem [resolvable:$true] %s295_s19 }
   0xa   :  { %386 = vmatprep.subr.bf16.mxu1 %v432_v2  ;;  %v393_v20 = vpack.c.bf16 %v122_v19, %v121_v18  ;;  %v124_v22 = vld [vmem:[%s563_s3 + $0x58] sm:$0xff]  ;;  %v125_v24 = vld [vmem:[%s563_s3 + $0x60] sm:$0xff]  ;;  %v126_v25 = vld [vmem:[%s563_s3 + $0x68] sm:$0xff]  ;;  %s412_s20 = scalar_lea.vmem %s296_s19, 32  ;;  %p413_p1 = scmp.lt.s32.totalorder %s296_s19, %s296_s19 }
   0xb   :  { %v396_v23 = vpack.c.bf16 %v124_v22, %v123_v21  ;;  %v399_v26 = vpack.c.bf16 %v126_v25, %v125_v24  ;;  %v127_v27 = vld [vmem:[%s563_s3 + $0x70] sm:$0xff]  ;;  %v128_v28 = vld [vmem:[%s563_s3 + $0x78] sm:$0xff]  ;;  %v303_v30 = vld [vmem:[%s562_s2] ss:$0 sm:$0xff] }
   0xc   :  { %v402_v29 = vpack.c.bf16 %v128_v28, %v127_v27  ;;  %v305_v35 = vld [vmem:[%s564_s4] ss:$0 sm:$0xff]  ;;  %s408_s4 = scalar_lea.vmem %s296_s19, 16 }
   0xd   :  { %388 = vmatpush3.bf16.msra.mxu1 %v387_v14  ;;  %v207_v40 = vld [vmem:[%s565_s5] sm:$0x1]  ;;  %p409_p0 = scmp.ne.s32.totalorder %s296_s19, %s408_s4  ;;  %p414_p2 = scmp.lt.s32.totalorder %s412_s20, %s408_s4 }
   0xe   :  { %389 = vmatprep.subr.bf16.mxu1 %v432_v2 }
   0xf   :  { %p415_p3 = por %p414_p2, %p413_p1 }
  0x11   :  { %391 = vmatpush3.bf16.msra.mxu1 %v390_v17  ;;  %p416_p4 = pnand %p415_p3, %p409_p0 }
  0x12   :  { %392 = vmatprep.subr.bf16.mxu1 %v432_v2 }
  0x15   :  { %394 = vmatpush3.bf16.msra.mxu1 %v393_v20 }
  0x16   :  { %395 = vmatprep.subr.bf16.mxu1 %v432_v2 }
  0x19   :  { %397 = vmatpush3.bf16.msra.mxu1 %v396_v23 }
  0x1a   :  { %398 = vmatprep.subr.bf16.mxu1 %v432_v2 }
  0x1d   :  { %400 = vmatpush3.bf16.msra.mxu1 %v399_v26 }
  0x1e   :  { %401 = vmatprep.subr.bf16.mxu1 %v432_v2 }
  0x21   :  { %403 = vmatpush3.bf16.msra.mxu1 %v402_v29 }
  0xda   :  { %v108_v31 = vpop.f32.mrb[0].mxu0 }
  0xdb   :  { %v109_v32 = vadd.f32 %v303_v30, %v108_v31  ;;  %v336_v33 = vpop.f32.mrb[1].mxu0 }
  0xdd   :  { %v112_v34 = vmax.f32 %v109_v32, 0.0 }
  0xdf   :  { %370 = vmatmul.mubr.f32.vlgmr.msra.gmra.mrb[0].mxu1 %v112_v34 }
 0x1b2   :  { %v202_v36 = vpop.f32.mrb[0].mxu1 }
 0x1b3   :  { %v203_v37 = vadd.f32 %v305_v35, %v202_v36  ;;  %v371_v38 = vpop.f32.mrb[1].mxu1 }
 0x1b5   :  { %v206_v39 = vmax.f32 %v203_v37, 0.0 }
 0x1b7   :  { %373 = vmatpush3.xpose.msk.msra.mxu0 %vm210_vm2, %v206_v39 }
 0x1ba   :  { %375 = vmatmul.mubr.msk.f32.vlgmr.msra.gmra.mrb[2].mxu0 %vm210_vm2, %v207_v40 }
 0x28d   :  { %v283_v42 = vpop.f32.mrb[2].mxu0 }
 0x28e   :  { %v284_v43 = vadd.f32 %v283_v42, %v209_v41  ;;  %v376_v44 = vpop.f32.mrb[3].mxu0 }
 0x290   :  { %288 = vst.msk [vmem:[#allocation3] sm:$0x1] %vm287_vm3, %v284_v43 }
 0x291   :  { %419 = shalt.err (!%p416_p4)
}
 0x292   :  { %s420_s6 = scalar_lea.hbm %s567_s7, 16 }
 0x293   :  { %p421_p5 = scmp.ne.s32.totalorder %s567_s7, %s420_s6  ;;  %p424_p6 = scmp.lt.u32.totalorder %s420_s6, %s567_s7 }
 0x295   :  { %p426_p7 = pnand %p424_p6, %p421_p5 }
 0x297   :  { %429 = shalt.err (!%p426_p7)
}
 0x298   :  { %298 = dma.vmem_to_hbm [thread:$0]  %s296_s19, 16, %s567_s7, [#allocation4]  }
 0x299   :  { %430 = dma.done.wait [#allocation4], 16  }
 0x29a   :  { %431 = vsyncadd [#allocation4], 4294967280 }
 0x29b   :  { %302 = vsyncpa [#allocation4], 1 }

</bundles_post_ra>
